<compile_context>
chip_gen: v6e
topology: v6e:2x2x1
jax: 0.10.0
libtpu: 0.0.40
codegen_flags: <defaults>
</compile_context>

<pallas_src>
import functools

import jax
import jax.numpy as jnp
from jax.experimental import pallas as pl
from jax.experimental.pallas import tpu as pltpu


_INTERNAL_SCRATCH = 2 * 1024 * 1024  # Mosaic internal scratch headroom


def _round_up(n: int, m: int) -> int:
    return ((n + m - 1) // m) * m


def _vmem_budget_bytes() -> int:
    """85% of physical VMEM (hardware-derived; never exceeds v7x's 64 MiB)."""
    try:
        cap = int(pltpu.get_tpu_info().vmem_capacity_bytes)
    except Exception:
        cap = 64 * 1024 * 1024  # conservative fallback (v7x physical)
    return int(0.85 * cap)


def _bf16_valu_ok() -> bool:
    """bf16 elementwise (bias+GELU) only where the VPU has bf16 lanes."""
    try:
        kind = jax.devices()[0].device_kind.lower()
    except Exception:
        return False
    return not any(v in kind for v in ("v2", "v3", "v4", "v5"))


# ----------------------------------------------------------------------------
# Kernels
# ----------------------------------------------------------------------------
def _residual_ff_kernel(x_ref, w1_ref, b1_ref, w2_ref, b2_ref, o_ref,
                        *, bf16_gelu):
    """Resident-weight variant. One (tm, Dp) row tile:
       o = gelu(x @ w1 + b1) @ w2 + b2 + x."""
    x = x_ref[...]                                            # (tm, Dp)
    h = jnp.dot(x.astype(w1_ref.dtype), w1_ref[...],
                preferred_element_type=jnp.float32)           # (tm, Hp) f32
    h = h + b1_ref[...]
    if bf16_gelu:
        h = jax.nn.gelu(h.astype(jnp.bfloat16))               # bf16 VALU/EUP
    else:
        h = jax.nn.gelu(h)                                    # f32 (v5e / exact)
    y = jnp.dot(h.astype(w2_ref.dtype), w2_ref[...],
                preferred_element_type=jnp.float32)           # (tm, Dp) f32
    y = y + b2_ref[...]
    o_ref[...] = (y + x.astype(jnp.float32)).astype(o_ref.dtype)


def _residual_ff_htiled_kernel(x_ref, w1_ref, b1_ref, w2_ref, b2_ref, o_ref,
                               acc_ref, *, bf16_gelu):
    """H-streamed variant: second grid axis over H chunks, f32 accumulator.
       GELU is elementwise along H, so per-chunk gelu(x@w1_chunk + b1_chunk)
       followed by @w2_chunk accumulation is exact."""
    hj = pl.program_id(1)

    @pl.when(hj == 0)
    def _():
        acc_ref[...] = jnp.zeros_like(acc_ref)

    x = x_ref[...]                                            # (tm, Dp)
    h = jnp.dot(x.astype(w1_ref.dtype), w1_ref[...],
                preferred_element_type=jnp.float32)           # (tm, th) f32
    h = h + b1_ref[...]
    if bf16_gelu:
        h = jax.nn.gelu(h.astype(jnp.bfloat16))
    else:
        h = jax.nn.gelu(h)
    acc_ref[...] += jnp.dot(h.astype(w2_ref.dtype), w2_ref[...],
                            preferred_element_type=jnp.float32)

    @pl.when(hj == pl.num_programs(1) - 1)
    def _():
        y = acc_ref[...] + b2_ref[...] + x.astype(jnp.float32)
        o_ref[...] = y.astype(o_ref.dtype)


# ----------------------------------------------------------------------------
# Wrapper
# ----------------------------------------------------------------------------
def residual_feedforward(x, w1, b1, w2, b2, *, compute_dtype=jnp.bfloat16,
                         lane=128, tm=None, h_tile=None):
    """out = (gelu(x @ w1 + b1) @ w2 + b2) + x via one fused Pallas kernel.

    x: [B, S, D]; w1: [D, H]; b1: [1, H]; w2: [H, D]; b2: [1, D]
    """
    B, S, D = x.shape
    H = w1.shape[1]
    M = B * S

    xsz = jnp.dtype(x.dtype).itemsize
    csz = jnp.dtype(compute_dtype).itemsize
    sublane = {4: 8, 2: 16, 1: 32}.get(xsz, 8)

    Dp = _round_up(D, lane)
    Hp = _round_up(H, lane)

    budget = _vmem_budget_bytes()

    # ----- VMEM footprint estimators (include cast temps + internal scratch) -
    def _resident_est(tm_):
        return int(2 * tm_ * Dp * xsz                  # x tiles (2 bufs)
                   + 2 * tm_ * Dp * xsz                # out tiles (2 bufs)
                   + 2 * Dp * Hp * csz                 # w1 + w2 (1 buf each)
                   + (Hp + Dp) * 4                     # biases (f32, 1 buf)
                   + tm_ * Hp * 4 + tm_ * Dp * 4       # f32 intermediates h, y
                   + tm_ * Hp * csz + tm_ * Dp * csz   # cast temporaries
                   + _INTERNAL_SCRATCH)

    def _htiled_est(tm_, th_):
        return int(2 * tm_ * Dp * xsz
                   + 2 * tm_ * Dp * xsz
                   + 2 * 2 * Dp * th_ * csz            # streamed w1/w2 tiles
                   + 2 * th_ * 4 + Dp * 4              # biases
                   + tm_ * th_ * 4 + tm_ * Dp * 4      # f32 chunk h + epilogue
                   + tm_ * th_ * csz + tm_ * Dp * csz  # cast temporaries
                   + tm_ * Dp * 4                      # f32 accumulator scratch
                   + _INTERNAL_SCRATCH)

    # ----- pick row tile / decide resident vs. H-streamed ---------------------
    raw_cands = [tm] if tm is not None else [512, 256, 128]
    cands, seen = [], set()
    for t in raw_cands:
        t_eff = min(_round_up(int(t), sublane), _round_up(M, sublane))
        if t_eff not in seen:
            seen.add(t_eff)
            cands.append(t_eff)

    use_htile = h_tile is not None
    chosen_tm, th = None, None

    if not use_htile:
        for t in cands:
            if _resident_est(t) <= budget:
                chosen_tm = t
                break
        if chosen_tm is None:
            use_htile = True  # weights too big to keep resident -> stream H

    if use_htile:
        if h_tile is not None:
            th = min(_round_up(int(h_tile), lane), Hp)
            for t in cands:
                if _htiled_est(t, th) <= budget:
                    chosen_tm = t
                    break
            if chosen_tm is None:
                chosen_tm = cands[-1]
        else:
            for t in cands:
                for th_c in (2048, 1024, 512, 256, 128):
                    th_c = min(th_c, Hp)
                    if _htiled_est(t, th_c) <= budget:
                        chosen_tm, th = t, th_c
                        break
                if th is not None:
                    break
            if th is None:
                chosen_tm, th = cands[-1], lane
        Hp = _round_up(Hp, th)  # make H grid exact

    # >= 2 row tiles when M allows, so v7x megacore actually shards the grid.
    if M > sublane:
        chosen_tm = min(chosen_tm, _round_up(-(-M // 2), sublane))

    Mp = _round_up(M, chosen_tm)

    # ----- pad operands -------------------------------------------------------
    x2 = x.reshape(M, D)
    if Dp != D:
        x2 = jnp.pad(x2, ((0, 0), (0, Dp - D)))
    if Mp != M:
        x2 = jnp.pad(x2, ((0, Mp - M), (0, 0)))
    if Dp != D or Hp != H:
        w1 = jnp.pad(w1, ((0, Dp - D), (0, Hp - H)))
        b1 = jnp.pad(b1, ((0, 0), (0, Hp - H)))
        w2 = jnp.pad(w2, ((0, Hp - H), (0, Dp - D)))
        b2 = jnp.pad(b2, ((0, 0), (0, Dp - D)))

    w1c = w1.astype(compute_dtype)
    w2c = w2.astype(compute_dtype)
    b1f = b1.astype(jnp.float32)
    b2f = b2.astype(jnp.float32)

    bf16_gelu = (_bf16_valu_ok()
                 and jnp.dtype(compute_dtype) == jnp.dtype(jnp.bfloat16))

    cost = pl.CostEstimate(
        flops=int(4 * Mp * Dp * Hp),
        transcendentals=int(Mp * Hp),
        bytes_accessed=int(2 * Mp * Dp * xsz + 2 * Dp * Hp * csz
                           + (Hp + Dp) * 4),
    )
    vmem_limit = int(budget)

    def _run(single_buffer_const):
        def const_spec(shape, index_map):
            if single_buffer_const:
                return pl.BlockSpec(shape, index_map,
                                    pipeline_mode=pl.Buffered(1))
            return pl.BlockSpec(shape, index_map)

        if use_htile:
            grid = (Mp // chosen_tm, Hp // th)
            return pl.pallas_call(
                functools.partial(_residual_ff_htiled_kernel,
                                  bf16_gelu=bf16_gelu),
                out_shape=jax.ShapeDtypeStruct((Mp, Dp), x.dtype),
                grid_spec=pltpu.PrefetchScalarGridSpec(
                    num_scalar_prefetch=0,
                    grid=grid,
                    in_specs=[
                        pl.BlockSpec((chosen_tm, Dp), lambda i, j: (i, 0)),
                        pl.BlockSpec((Dp, th), lambda i, j: (0, j)),
                        pl.BlockSpec((1, th), lambda i, j: (0, j)),
                        pl.BlockSpec((th, Dp), lambda i, j: (j, 0)),
                        const_spec((1, Dp), lambda i, j: (0, 0)),
                    ],
                    out_specs=pl.BlockSpec((chosen_tm, Dp),
                                           lambda i, j: (i, 0)),
                    scratch_shapes=[pltpu.VMEM((chosen_tm, Dp), jnp.float32)],
                ),
                compiler_params=pltpu.CompilerParams(
                    dimension_semantics=("parallel", "arbitrary"),
                    vmem_limit_bytes=vmem_limit),
                cost_estimate=cost,
            )(x2, w1c, b1f, w2c, b2f)

        grid = (Mp // chosen_tm,)
        return pl.pallas_call(
            functools.partial(_residual_ff_kernel, bf16_gelu=bf16_gelu),
            out_shape=jax.ShapeDtypeStruct((Mp, Dp), x.dtype),
            grid_spec=pltpu.PrefetchScalarGridSpec(
                num_scalar_prefetch=0,
                grid=grid,
                in_specs=[
                    pl.BlockSpec((chosen_tm, Dp), lambda i: (i, 0)),  # x rows
                    const_spec((Dp, Hp), lambda i: (0, 0)),           # w1
                    const_spec((1, Hp), lambda i: (0, 0)),            # b1
                    const_spec((Hp, Dp), lambda i: (0, 0)),           # w2
                    const_spec((1, Dp), lambda i: (0, 0)),            # b2
                ],
                out_specs=pl.BlockSpec((chosen_tm, Dp), lambda i: (i, 0)),
            ),
            compiler_params=pltpu.CompilerParams(
                dimension_semantics=("parallel",),
                vmem_limit_bytes=vmem_limit),
            cost_estimate=cost,
        )(x2, w1c, b1f, w2c, b2f)

    try:
        out2 = _run(True)
    except Exception:
        # Retry without pipeline_mode=pl.Buffered(1) if this jax rejects it.
        out2 = _run(False)

    return out2[:M, :D].reshape(B, S, D)


if __name__ == "__main__":
    # Small shapes: batch=2, seq=8, hidden dim=32, mlp hidden=64
    B, S, D, H = 2, 8, 32, 64

    key = jax.random.PRNGKey(0)
    kx, k1, k2, k3, k4 = jax.random.split(key, 5)

    x = jax.random.normal(kx, (B, S, D), dtype=jnp.float32)
    w1 = jax.random.normal(k1, (D, H), dtype=jnp.float32) * 0.02
    b1 = jax.random.normal(k2, (1, H), dtype=jnp.float32) * 0.02
    w2 = jax.random.normal(k3, (H, D), dtype=jnp.float32) * 0.02
    b2 = jax.random.normal(k4, (1, D), dtype=jnp.float32) * 0.02

    # Reference in plain JAX: fn(x) + x
    ref = jax.nn.gelu(x @ w1 + b1) @ w2 + b2 + x

    # Exact path (f32 MXU operands, resident weights) — tight tolerance.
    out_f32 = jax.block_until_ready(
        residual_feedforward(x, w1, b1, w2, b2, compute_dtype=jnp.float32))
    assert out_f32.shape == x.shape
    assert jnp.allclose(out_f32, ref, atol=1e-4, rtol=1e-4)

    # Fast path (bf16 MXU operands, f32 accumulation + f32 residual).
    out_bf16 = jax.block_until_ready(residual_feedforward(x, w1, b1, w2, b2))
    assert out_bf16.shape == x.shape
    assert jnp.allclose(out_bf16, ref, atol=2e-2, rtol=2e-2)

    # Exercise the H-tiled fallback (streamed weights + f32 accumulator).
    H2 = 256
    k5, k6 = jax.random.split(k4)
    w1b = jax.random.normal(k5, (D, H2), dtype=jnp.float32) * 0.02
    b1b = jnp.zeros((1, H2), dtype=jnp.float32)
    w2b = jax.random.normal(k6, (H2, D), dtype=jnp.float32) * 0.02
    ref2 = jax.nn.gelu(x @ w1b + b1b) @ w2b + b2 + x
    out_ht = jax.block_until_ready(
        residual_feedforward(x, w1b, b1b, w2b, b2,
                             compute_dtype=jnp.float32, h_tile=128))
    assert out_ht.shape == x.shape
    assert jnp.allclose(out_ht, ref2, atol=1e-4, rtol=1e-4)

    print("KERNEL_OK")
</pallas_src>

<mosaic_0001>
module attributes {stable_mosaic.version = 11 : i64} {
  func.func @_residual_ff_kernel(%arg0: i32, %arg1: memref<8x128xf32, #tpu.memory_space<vmem>>, %arg2: memref<128x128xf32, #tpu.memory_space<vmem>>, %arg3: memref<1x128xf32, #tpu.memory_space<vmem>>, %arg4: memref<128x128xf32, #tpu.memory_space<vmem>>, %arg5: memref<1x128xf32, #tpu.memory_space<vmem>>, %arg6: memref<8x128xf32, #tpu.memory_space<vmem>>) attributes {dimension_semantics = [#tpu.dimension_semantics<parallel>], iteration_bounds = array<i64: 2>, scalar_prefetch = 0 : i64, scratch_operands = 0 : i64, tpu.core_type = #tpu.core_type<tc>, window_params = [{transform_indices = @transform_0, window_bounds = array<i64: 8, 128>}, {pipeline_mode = #tpu.pipeline_mode<synchronous>, transform_indices = @transform_1, window_bounds = array<i64: 128, 128>}, {pipeline_mode = #tpu.pipeline_mode<synchronous>, transform_indices = @transform_2, window_bounds = array<i64: 1, 128>}, {pipeline_mode = #tpu.pipeline_mode<synchronous>, transform_indices = @transform_3, window_bounds = array<i64: 128, 128>}, {pipeline_mode = #tpu.pipeline_mode<synchronous>, transform_indices = @transform_4, window_bounds = array<i64: 1, 128>}, {transform_indices = @transform_5, window_bounds = array<i64: 8, 128>}]} {
    %c0 = arith.constant 0 : index
    %c0_0 = arith.constant 0 : index
    %0 = vector.load %arg1[%c0, %c0_0] : memref<8x128xf32, #tpu.memory_space<vmem>>, vector<8x128xf32>
    %c0_1 = arith.constant 0 : index
    %c0_2 = arith.constant 0 : index
    %1 = vector.load %arg2[%c0_1, %c0_2] : memref<128x128xf32, #tpu.memory_space<vmem>>, vector<128x128xf32>
    %cst = arith.constant dense<0.000000e+00> : vector<8x128xf32>
    %2 = tpu.matmul %0, %1, %cst {dimension_numbers = #tpu.dot_dimension_numbers<[1], [0], [0], [1], [0, 0, 1, 1], [], []>} : vector<8x128xf32>, vector<128x128xf32>, vector<8x128xf32> -> vector<8x128xf32>
    %c0_3 = arith.constant 0 : index
    %c0_4 = arith.constant 0 : index
    %3 = vector.load %arg3[%c0_3, %c0_4] : memref<1x128xf32, #tpu.memory_space<vmem>>, vector<1x128xf32>
    %4 = vector.broadcast %3 : vector<1x128xf32> to vector<8x128xf32>
    %5 = arith.addf %2, %4 : vector<8x128xf32>
    %6 = arith.mulf %5, %5 : vector<8x128xf32>
    %7 = arith.mulf %5, %6 : vector<8x128xf32>
    %cst_5 = arith.constant 4.471500e-02 : f32
    %8 = vector.broadcast %cst_5 : f32 to vector<8x128xf32>
    %9 = arith.mulf %8, %7 : vector<8x128xf32>
    %10 = arith.addf %5, %9 : vector<8x128xf32>
    %cst_6 = arith.constant 0.797884583 : f32
    %11 = vector.broadcast %cst_6 : f32 to vector<8x128xf32>
    %12 = arith.mulf %11, %10 : vector<8x128xf32>
    %13 = math.tanh %12 : vector<8x128xf32>
    %cst_7 = arith.constant 1.000000e+00 : f32
    %14 = vector.broadcast %cst_7 : f32 to vector<8x128xf32>
    %15 = arith.addf %14, %13 : vector<8x128xf32>
    %cst_8 = arith.constant 5.000000e-01 : f32
    %16 = vector.broadcast %cst_8 : f32 to vector<8x128xf32>
    %17 = arith.mulf %16, %15 : vector<8x128xf32>
    %18 = arith.mulf %5, %17 : vector<8x128xf32>
    %c0_9 = arith.constant 0 : index
    %c0_10 = arith.constant 0 : index
    %19 = vector.load %arg4[%c0_9, %c0_10] : memref<128x128xf32, #tpu.memory_space<vmem>>, vector<128x128xf32>
    %cst_11 = arith.constant dense<0.000000e+00> : vector<8x128xf32>
    %20 = tpu.matmul %18, %19, %cst_11 {dimension_numbers = #tpu.dot_dimension_numbers<[1], [0], [0], [1], [0, 0, 1, 1], [], []>} : vector<8x128xf32>, vector<128x128xf32>, vector<8x128xf32> -> vector<8x128xf32>
    %c0_12 = arith.constant 0 : index
    %c0_13 = arith.constant 0 : index
    %21 = vector.load %arg5[%c0_12, %c0_13] : memref<1x128xf32, #tpu.memory_space<vmem>>, vector<1x128xf32>
    %22 = vector.broadcast %21 : vector<1x128xf32> to vector<8x128xf32>
    %23 = arith.addf %20, %22 : vector<8x128xf32>
    %24 = arith.addf %23, %0 : vector<8x128xf32>
    %c0_14 = arith.constant 0 : index
    %c0_15 = arith.constant 0 : index
    %25 = vector.load %arg6[%c0_14, %c0_15] : memref<8x128xf32, #tpu.memory_space<vmem>>, vector<8x128xf32>
    tpu.vector_store %arg6[%c0_14, %c0_15], %24 {strides = array<i32>} : memref<8x128xf32, #tpu.memory_space<vmem>>, vector<8x128xf32>,
    return
  }
  func.func @transform_0(%arg0: i32) -> (i32, i32) {
    %c0_i32 = arith.constant 0 : i32
    %c0_i32_0 = arith.constant 0 : i32
    return %arg0, %c0_i32 : i32, i32
  }
  func.func @transform_1(%arg0: i32) -> (i32, i32) {
    %c0_i32 = arith.constant 0 : i32
    %c0_i32_0 = arith.constant 0 : i32
    %c0_i32_1 = arith.constant 0 : i32
    return %c0_i32, %c0_i32_0 : i32, i32
  }
  func.func @transform_2(%arg0: i32) -> (i32, i32) {
    %c0_i32 = arith.constant 0 : i32
    %c0_i32_0 = arith.constant 0 : i32
    %c0_i32_1 = arith.constant 0 : i32
    return %c0_i32, %c0_i32_0 : i32, i32
  }
  func.func @transform_3(%arg0: i32) -> (i32, i32) {
    %c0_i32 = arith.constant 0 : i32
    %c0_i32_0 = arith.constant 0 : i32
    %c0_i32_1 = arith.constant 0 : i32
    return %c0_i32, %c0_i32_0 : i32, i32
  }
  func.func @transform_4(%arg0: i32) -> (i32, i32) {
    %c0_i32 = arith.constant 0 : i32
    %c0_i32_0 = arith.constant 0 : i32
    %c0_i32_1 = arith.constant 0 : i32
    return %c0_i32, %c0_i32_0 : i32, i32
  }
  func.func @transform_5(%arg0: i32) -> (i32, i32) {
    %c0_i32 = arith.constant 0 : i32
    %c0_i32_0 = arith.constant 0 : i32
    return %arg0, %c0_i32 : i32, i32
  }
}

module attributes {stable_mosaic.version = 11 : i64} {
  func.func @_residual_ff_kernel(%arg0: i32, %arg1: memref<8x128xf32, #tpu.memory_space<vmem>>, %arg2: memref<128x128xf32, #tpu.memory_space<vmem>>, %arg3: memref<1x128xf32, #tpu.memory_space<vmem>>, %arg4: memref<128x128xf32, #tpu.memory_space<vmem>>, %arg5: memref<1x128xf32, #tpu.memory_space<vmem>>, %arg6: memref<8x128xf32, #tpu.memory_space<vmem>>) attributes {dimension_semantics = [#tpu.dimension_semantics<parallel>], iteration_bounds = array<i64: 2>, scalar_prefetch = 0 : i64, scratch_operands = 0 : i64, tpu.core_type = #tpu.core_type<tc>, window_params = [{transform_indices = @transform_0, window_bounds = array<i64: 8, 128>}, {pipeline_mode = #tpu.pipeline_mode<synchronous>, transform_indices = @transform_1, window_bounds = array<i64: 128, 128>}, {pipeline_mode = #tpu.pipeline_mode<synchronous>, transform_indices = @transform_2, window_bounds = array<i64: 1, 128>}, {pipeline_mode = #tpu.pipeline_mode<synchronous>, transform_indices = @transform_3, window_bounds = array<i64: 128, 128>}, {pipeline_mode = #tpu.pipeline_mode<synchronous>, transform_indices = @transform_4, window_bounds = array<i64: 1, 128>}, {transform_indices = @transform_5, window_bounds = array<i64: 8, 128>}]} {
    %c0 = arith.constant 0 : index
    %c0_0 = arith.constant 0 : index
    %0 = vector.load %arg1[%c0, %c0_0] : memref<8x128xf32, #tpu.memory_space<vmem>>, vector<8x128xf32>
    %c0_1 = arith.constant 0 : index
    %c0_2 = arith.constant 0 : index
    %1 = vector.load %arg2[%c0_1, %c0_2] : memref<128x128xf32, #tpu.memory_space<vmem>>, vector<128x128xf32>
    %cst = arith.constant dense<0.000000e+00> : vector<8x128xf32>
    %2 = tpu.matmul %0, %1, %cst {dimension_numbers = #tpu.dot_dimension_numbers<[1], [0], [0], [1], [0, 0, 1, 1], [], []>} : vector<8x128xf32>, vector<128x128xf32>, vector<8x128xf32> -> vector<8x128xf32>
    %c0_3 = arith.constant 0 : index
    %c0_4 = arith.constant 0 : index
    %3 = vector.load %arg3[%c0_3, %c0_4] : memref<1x128xf32, #tpu.memory_space<vmem>>, vector<1x128xf32>
    %4 = vector.broadcast %3 : vector<1x128xf32> to vector<8x128xf32>
    %5 = arith.addf %2, %4 : vector<8x128xf32>
    %6 = arith.mulf %5, %5 : vector<8x128xf32>
    %7 = arith.mulf %5, %6 : vector<8x128xf32>
    %cst_5 = arith.constant 4.471500e-02 : f32
    %8 = vector.broadcast %cst_5 : f32 to vector<8x128xf32>
    %9 = arith.mulf %8, %7 : vector<8x128xf32>
    %10 = arith.addf %5, %9 : vector<8x128xf32>
    %cst_6 = arith.constant 0.797884583 : f32
    %11 = vector.broadcast %cst_6 : f32 to vector<8x128xf32>
    %12 = arith.mulf %11, %10 : vector<8x128xf32>
    %13 = math.tanh %12 : vector<8x128xf32>
    %cst_7 = arith.constant 1.000000e+00 : f32
    %14 = vector.broadcast %cst_7 : f32 to vector<8x128xf32>
    %15 = arith.addf %14, %13 : vector<8x128xf32>
    %cst_8 = arith.constant 5.000000e-01 : f32
    %16 = vector.broadcast %cst_8 : f32 to vector<8x128xf32>
    %17 = arith.mulf %16, %15 : vector<8x128xf32>
    %18 = arith.mulf %5, %17 : vector<8x128xf32>
    %c0_9 = arith.constant 0 : index
    %c0_10 = arith.constant 0 : index
    %19 = vector.load %arg4[%c0_9, %c0_10] : memref<128x128xf32, #tpu.memory_space<vmem>>, vector<128x128xf32>
    %cst_11 = arith.constant dense<0.000000e+00> : vector<8x128xf32>
    %20 = tpu.matmul %18, %19, %cst_11 {dimension_numbers = #tpu.dot_dimension_numbers<[1], [0], [0], [1], [0, 0, 1, 1], [], []>} : vector<8x128xf32>, vector<128x128xf32>, vector<8x128xf32> -> vector<8x128xf32>
    %c0_12 = arith.constant 0 : index
    %c0_13 = arith.constant 0 : index
    %21 = vector.load %arg5[%c0_12, %c0_13] : memref<1x128xf32, #tpu.memory_space<vmem>>, vector<1x128xf32>
    %22 = vector.broadcast %21 : vector<1x128xf32> to vector<8x128xf32>
    %23 = arith.addf %20, %22 : vector<8x128xf32>
    %24 = arith.addf %23, %0 : vector<8x128xf32>
    %c0_14 = arith.constant 0 : index
    %c0_15 = arith.constant 0 : index
    %25 = vector.load %arg6[%c0_14, %c0_15] : memref<8x128xf32, #tpu.memory_space<vmem>>, vector<8x128xf32>
    tpu.vector_store %arg6[%c0_14, %c0_15], %24 {strides = array<i32>} : memref<8x128xf32, #tpu.memory_space<vmem>>, vector<8x128xf32>,
    return
  }
  func.func @transform_0(%arg0: i32) -> (i32, i32) {
    %c0_i32 = arith.constant 0 : i32
    %c0_i32_0 = arith.constant 0 : i32
    return %arg0, %c0_i32 : i32, i32
  }
  func.func @transform_1(%arg0: i32) -> (i32, i32) {
    %c0_i32 = arith.constant 0 : i32
    %c0_i32_0 = arith.constant 0 : i32
    %c0_i32_1 = arith.constant 0 : i32
    return %c0_i32, %c0_i32_0 : i32, i32
  }
  func.func @transform_2(%arg0: i32) -> (i32, i32) {
    %c0_i32 = arith.constant 0 : i32
    %c0_i32_0 = arith.constant 0 : i32
    %c0_i32_1 = arith.constant 0 : i32
    return %c0_i32, %c0_i32_0 : i32, i32
  }
  func.func @transform_3(%arg0: i32) -> (i32, i32) {
    %c0_i32 = arith.constant 0 : i32
    %c0_i32_0 = arith.constant 0 : i32
    %c0_i32_1 = arith.constant 0 : i32
    return %c0_i32, %c0_i32_0 : i32, i32
  }
  func.func @transform_4(%arg0: i32) -> (i32, i32) {
    %c0_i32 = arith.constant 0 : i32
    %c0_i32_0 = arith.constant 0 : i32
    %c0_i32_1 = arith.constant 0 : i32
    return %c0_i32, %c0_i32_0 : i32, i32
  }
  func.func @transform_5(%arg0: i32) -> (i32, i32) {
    %c0_i32 = arith.constant 0 : i32
    %c0_i32_0 = arith.constant 0 : i32
    return %arg0, %c0_i32 : i32, i32
  }
}

</mosaic_0001>

<bundles_post_ra>
// kernel: tpu_custom_call.1
= control target key start
LH: loop header
LB: loop body
LE: loop exit
PB: predicated region body
PF: predicated region fallthrough
CT: control target
= control target key end

     0   :  { %10 = vsyncpa [#allocation3], 0  ;;  %s1169_s0 = inlined_call_operand.hbm [shape: f32[16,128], index: 0, kind: input, shape index: {}]   ;;  %s1170_s1 = inlined_call_operand.hbm [shape: f32[128,128], index: 1, kind: input, shape index: {}]   ;;  %s1171_s2 = inlined_call_operand.vmem [shape: f32[1,128], index: 2, kind: input, shape index: {}]   ;;  %s1172_s3 = inlined_call_operand.hbm [shape: f32[128,128], index: 3, kind: input, shape index: {}]   ;;  %s1173_s4 = inlined_call_operand.vmem [shape: f32[1,128], index: 4, kind: input, shape index: {}]   ;;  %s1174_s5 = inlined_call_operand.hbm [shape: f32[16,128], index: 5, kind: output, shape index: {}]  }
   0x1   :  { %12 = vsyncpa [#allocation3 + $0x1], 0 }
   0x2   :  { %13 = vsyncpa [#allocation6], 0 }
   0x3   :  { %14 = vsyncpa [#allocation4], 0 }
   0x4   :  { %16 = vsyncpa [#allocation4 + $0x1], 0  ;;  %s953_s18 = smov 0   ;;  %s955_s19 = smov 0  }
   0x5   :  { %s957_s20 = smov 0   ;;  %s959_s21 = smov 0  }
   0x6 LB: > { %s974_s22 = sadd.s32 4294967295, %s913_s21   ;;  %s570_s23 = sadd.s32 4294967294, %s913_s21   ;;  %s913_s21 = sphi %s959_s21, %s1196_s21   ;;  %s909_s20 = sphi %s957_s20, %s1195_s20   ;;  %s905_s19 = sphi %s955_s19, %s1194_s19   ;;  %s901_s18 = sphi %s953_s18, %s1193_s18  }
   0x7   : > { %p42_p0 = scmp.ne.s32.totalorder %s905_s19, %s901_s18  ;;  %p1175_p1 = scmp.eq.s32.totalorder %s974_s22, 0 }
   0x8   : > { %p156_p3 = scmp.eq.s32.totalorder %s570_s23, 1  ;;  %p571_p5 = scmp.ge.s32.totalorder %s913_s21, 1 }
   0x9   : > { %p983_p4 = por %p1175_p1, %p42_p0  ;;  %p163_p7 = scmp.lt.s32.totalorder %s913_s21, 3 }
   0xa   : > { %p988_p6 = por %p156_p3, %p42_p0  ;;  %s915_s27 = smov [#allocation5]  }
   0xb   : > { %s1179_s24 = scalar_select %p983_p4, 1, 0 }
   0xc   : > { %s1180_s25 = scalar_select %p988_p6, 1, 0 }
   0xd   : > { %p993_p8 = pnand %p571_p5, %p163_p7  ;;  %s175_s28 = sshll.u32 %s915_s27, 4  ;;  %s176_s28 = int_to_ptr.vmem [resolvable:$true] %s175_s28 }
   0xe   : > { %s916_s30 = smov [#allocation7]   ;;  %s776_s7 = scalar_lea.vmem %s176_s28, 2048 }
   0xf   : > { %s1181_s26 = scalar_select %p993_p8, 1, 0 }
  0x10   : > { %p704_p9 = pneg %p993_p8  ;;  %s191_s6 = sshll.u32 %s916_s30, 4  ;;  %s192_s6 = int_to_ptr.vmem [resolvable:$true] %s191_s6 }
  0x11   : > { %p777_p13 = scmp.ne.s32.totalorder %s176_s28, %s776_s7  ;;  %p784_p5 = scmp.lt.s32.totalorder %s176_s28, %s176_s28 }
  0x12   : > { %p1002_p11 = pnand %p704_p9, %p1175_p1  ;;  %p785_p7 = scmp.lt.s32.totalorder %s776_s7, %s776_s7 }
  0x14   : > { %p767_p12 = pneg %p1002_p11  ;;  %p786_p10 = por %p785_p7, %p784_p5 }
  0x16   : > { %p779_p0 = pnand %p777_p13, %p767_p12 }
  0x18   : > { %p780_p3 = pneg %p779_p0 }
  0x1a   : > { %p787_p9 = pnand %p786_p10, %p780_p3 }
  0x1c   : > { %790 = shalt.err (!%p787_p9)
}
  0x1d   : > { %s917_s8 = smov 128   ;;  %s918_s9 = smov 8  }
  0x1e   : > { %707 = dma.hbm_to_vmem [thread:$0]  (!%p1002_p11), %s1170_s1, 2048, %s176_s28, [#allocation6], %s917_s8, %s917_s8, %s918_s9  }
  0x1f   : > { %s802_s12 = scalar_lea.vmem %s192_s6, 2048  ;;  %p810_p2 = scmp.lt.s32.totalorder %s192_s6, %s192_s6 }
  0x20   : > { %p803_p1 = scmp.ne.s32.totalorder %s192_s6, %s802_s12  ;;  %p811_p6 = scmp.lt.s32.totalorder %s802_s12, %s802_s12 }
  0x22   : > { %p805_p13 = pnand %p803_p1, %p767_p12  ;;  %p812_p5 = por %p811_p6, %p810_p2 }
  0x24   : > { %p806_p0 = pneg %p805_p13 }
  0x26   : > { %p813_p10 = pnand %p812_p5, %p806_p0 }
  0x28   : > { %816 = shalt.err (!%p813_p10)
}
  0x29   : > { %710 = dma.hbm_to_vmem [thread:$0]  (!%p1002_p11), %s1172_s3, 2048, %s192_s6, [#allocation6], %s917_s8, %s917_s8, %s918_s9  }
  0x2a   : > { %s1025_s15 = sadd.s32 1, %s913_s21   ;;  %s29_s16 = sadd.s32 1, %s909_s20 }
  0x2b   : > { %s26_s17 = ssub.s32 %s913_s21, %s1025_s15  ;;  %p36_p1 = scmp.ne.s32.totalorder %s909_s20, %s905_s19 }
  0x2c   : > { %p27_p2 = scmp.eq.s32.totalorder %s26_s17, 0  ;;  %p37_p6 = scmp.eq.s32.totalorder %s913_s21, 0 }
  0x2d   : > { %p1183_p12 = scmp.eq.s32.totalorder %s974_s22, 1  ;;  %p721_p7 = scmp.lt.s32.totalorder %s913_s21, 2 }
  0x2e   : > { %s1041_s27 = scalar_select %p27_p2, %s909_s20, %s29_s16  }
  0x2f   : > { %p1035_p3 = por %p1183_p12, %p36_p1  ;;  %p38_p9 = por %p37_p6, %p36_p1 }
  0x30   : > { %s208_s28 = sand.u32 1, %s909_s20   ;;  %s576_s30 = sshll.u32 %s913_s21, 7 }
  0x31   : > { %s1184_s23 = scalar_select %p1035_p3, 1, 0 }
  0x32   : > { %s575_s29 = sshll.u32 %s208_s28, 3  ;;  %s1048_s8 = scalar_lea.hbm %s1169_s0, %s576_s30 }
  0x33   : > { %s212_s9 = scalar_lea.vmem [#allocation2], %s575_s29  ;;  %p1050_p11 = pnand %p721_p7, %p38_p9 }
  0x34   : > { %s219_s10 = sshll.u32 %s212_s9, 4  ;;  %s209_s12 = scalar_lea.sflag [#allocation3], %s208_s28  ;;  %s220_s10 = int_to_ptr.vmem [resolvable:$true] %s219_s10 }
  0x35   : > { %s817_s13 = scalar_lea.hbm %s1048_s8, 128  ;;  %p819_p0 = pneg %p1050_p11 }
  0x36   : > { %p818_p13 = scmp.ne.s32.totalorder %s1048_s8, %s817_s13  ;;  %s822_s17 = scalar_lea.hbm %s1169_s0, 256 }
  0x37   : > { %p823_p1 = scmp.lt.s32.totalorder %s1048_s8, %s1169_s0  ;;  %p824_p2 = scmp.lt.s32.totalorder %s822_s17, %s817_s13 }
  0x38   : > { %p820_p5 = pnand %p819_p0, %p818_p13 }
  0x39   : > { %p825_p6 = por %p824_p2, %p823_p1 }
  0x3a   : > { %p821_p10 = pneg %p820_p5 }
  0x3c   : > { %p826_p12 = pnand %p825_p6, %p821_p10 }
  0x3e   : > { %829 = shalt.err (!%p826_p12)
}
  0x3f   : > { %s830_s6 = scalar_lea.vmem %s220_s10, 128  ;;  %s919_s28 = smov [#allocation2]  }
  0x40   : > { %p831_p7 = scmp.ne.s32.totalorder %s220_s10, %s830_s6  ;;  %s835_s7 = sshll.u32 %s919_s28, 4  ;;  %s836_s7 = int_to_ptr.vmem [resolvable:$false] %s835_s7 }
  0x41   : > { %s837_s9 = scalar_lea.vmem %s836_s7, 256  ;;  %p838_p13 = scmp.lt.s32.totalorder %s220_s10, %s836_s7 }
  0x42   : > { %p833_p9 = pnand %p831_p7, %p819_p0  ;;  %p839_p5 = scmp.lt.s32.totalorder %s837_s9, %s830_s6 }
  0x44   : > { %p834_p3 = pneg %p833_p9  ;;  %p840_p4 = por %p839_p5, %p838_p13 }
  0x46   : > { %p841_p8 = pnand %p840_p4, %p834_p3 }
  0x48   : > { %844 = shalt.err (!%p841_p8)
}
  0x49   : > { %714 = dma.hbm_to_vmem [thread:$0]  (!%p1050_p11), %s1048_s8, 128, %s220_s10, %s209_s12  }
  0x4a   : > { %p1186_p10 = scmp.ne.s32.totalorder %s1181_s26, 0 }
  0x4b   : > { %s1071_s13 = sand.u32 (!%p1186_p10), 1, %s905_s19   ;;  %p1187_p4 = scmp.ne.s32.totalorder (!%p1186_p10), %s1179_s24, 0 }
  0x4c   : > { %228 = sbr.rel (%p1186_p10) target bundleno = 554 (0x22a), region = 40  ;;  %s578_s14 = sshll.u32 (!%p1186_p10), %s1071_s13, 3 }
  0x4d   : > { %s231_s16 = scalar_lea.sflag (!%p1186_p10), [#allocation3], %s1071_s13  ;;  %s1077_s17 = scalar_lea.vmem (!%p1186_p10), [#allocation2], %s578_s14 }
  0x51   : > { %888 = dma.done.wait (%p1187_p4), %s231_s16, 128  }
  0x52   : > { %890 = vsyncadd (%p1187_p4), %s231_s16, 4294967168  ;;  %p1188_p8 = scmp.eq.s32.totalorder %s974_s22, 0 }
  0x54   : > { %892 = dma.done.wait (%p1188_p8), [#allocation6], 4096   ;;  %p1189_p3 = pmov %p1188_p8 }
  0x55   : > { %v920_v0 = vmov 0.0   ;;  %vm921_vm0 = vmmov 0   ;;  %v285_v1 = vld [vmem:[#allocation5 + $0x78] sm:$0xff]  ;;  %v284_v2 = vld [vmem:[#allocation5 + $0x70] sm:$0xff]  ;;  %v283_v3 = vld [vmem:[#allocation5 + $0x68] sm:$0xff]  ;;  %s585_s11 = sshll.u32 %s974_s22, 7 }
  0x56   : > { %894 = vsyncadd (%p1189_p3), [#allocation6], 4294963200  ;;  %622 = vmatprep.subr.mxu0 %v920_v0  ;;  %654 = vmatprep.mubr.msk.f32.mxu0 %vm921_vm0, %v920_v0  ;;  %v282_v4 = vld [vmem:[#allocation5 + $0x60] sm:$0xff]  ;;  %v281_v5 = vld [vmem:[#allocation5 + $0x58] sm:$0xff]  ;;  %s268_s12 = scalar_lea.vmem [#allocation8], %s578_s14  ;;  %s479_s28 = scalar_lea.hbm %s1174_s5, %s585_s11 }
  0x57   : > { %657 = vmatprep.subr.mxu1 %v920_v0  ;;  %689 = vmatprep.mubr.msk.f32.mxu1 %vm921_vm0, %v920_v0  ;;  %v280_v6 = vld [vmem:[#allocation5 + $0x50] sm:$0xff]  ;;  %v279_v7 = vld [vmem:[#allocation5 + $0x48] sm:$0xff]  ;;  %v278_v8 = vld [vmem:[#allocation5 + $0x40] sm:$0xff]  ;;  %s481_s30 = sshll.u32 %s268_s12, 4  ;;  %s468_s7 = scalar_lea.sflag [#allocation4], %s1071_s13  ;;  %s482_s30 = int_to_ptr.vmem [resolvable:$true] %s481_s30 }
  0x58   : > { %623 = vmatpush3.msra.mxu0 %v285_v1  ;;  %v277_v9 = vld [vmem:[#allocation5 + $0x38] sm:$0xff]  ;;  %v276_v10 = vld [vmem:[#allocation5 + $0x30] sm:$0xff]  ;;  %v275_v11 = vld [vmem:[#allocation5 + $0x28] sm:$0xff]  ;;  %s845_s9 = scalar_lea.vmem %s482_s30, 128  ;;  %p1190_p0 = scmp.ne.s32.totalorder %s1184_s23, 0 }
  0x59   : > { %624 = vmatprep.subr.mxu0 %v920_v0  ;;  %v274_v12 = vld [vmem:[#allocation5 + $0x20] sm:$0xff]  ;;  %v273_v13 = vld [vmem:[#allocation5 + $0x18] sm:$0xff]  ;;  %v272_v14 = vld [vmem:[#allocation5 + $0x10] sm:$0xff]  ;;  %p846_p11 = scmp.ne.s32.totalorder %s482_s30, %s845_s9  ;;  %s922_s22 = smov [#allocation8]  }
  0x5a   : > { %625 = vmatpush3.msra.mxu0 %v284_v2  ;;  %v271_v15 = vld [vmem:[#allocation5 + $0x8] sm:$0xff]  ;;  %v270_v16 = vld [vmem:[#allocation5] sm:$0xff]  ;;  %v1106_v17 = vld [vmem:[%s1077_s17] sm:$0xff]  ;;  %s849_s16 = sshll.u32 %s922_s22, 4  ;;  %s850_s16 = int_to_ptr.vmem [resolvable:$false] %s849_s16 }
  0x5b   : > { %626 = vmatprep.subr.mxu0 %v920_v0  ;;  %v387_v18 = vld [vmem:[#allocation7 + $0x78] sm:$0xff]  ;;  %v386_v19 = vld [vmem:[#allocation7 + $0x70] sm:$0xff]  ;;  %v385_v20 = vld [vmem:[#allocation7 + $0x68] sm:$0xff]  ;;  %p847_p1 = pnand %p846_p11, %p1190_p0  ;;  %s851_s14 = scalar_lea.vmem %s850_s16, 256 }
  0x5c   : > { %627 = vmatpush3.msra.mxu0 %v283_v3  ;;  %658 = vmatpush3.msra.mxu1 %v387_v18  ;;  %v384_v21 = vld [vmem:[#allocation7 + $0x60] sm:$0xff]  ;;  %v383_v22 = vld [vmem:[#allocation7 + $0x58] sm:$0xff]  ;;  %v382_v23 = vld [vmem:[#allocation7 + $0x50] sm:$0xff]  ;;  %p852_p6 = scmp.lt.s32.totalorder %s482_s30, %s850_s16  ;;  %p853_p12 = scmp.lt.s32.totalorder %s851_s14, %s845_s9 }
  0x5d   : > { %628 = vmatprep.subr.mxu0 %v920_v0  ;;  %659 = vmatprep.subr.mxu1 %v920_v0  ;;  %v381_v24 = vld [vmem:[#allocation7 + $0x48] sm:$0xff]  ;;  %v380_v25 = vld [vmem:[#allocation7 + $0x40] sm:$0xff]  ;;  %v379_v26 = vld [vmem:[#allocation7 + $0x38] sm:$0xff]  ;;  %p848_p2 = pneg %p847_p1 }
  0x5e   : > { %629 = vmatpush3.msra.mxu0 %v282_v4  ;;  %660 = vmatpush3.msra.mxu1 %v386_v19  ;;  %v378_v27 = vld [vmem:[#allocation7 + $0x30] sm:$0xff]  ;;  %v377_v28 = vld [vmem:[#allocation7 + $0x28] sm:$0xff]  ;;  %v376_v29 = vld [vmem:[#allocation7 + $0x20] sm:$0xff]  ;;  %p854_p7 = por %p853_p12, %p852_p6 }
  0x5f   : > { %630 = vmatprep.subr.mxu0 %v920_v0  ;;  %661 = vmatprep.subr.mxu1 %v920_v0  ;;  %v375_v30 = vld [vmem:[#allocation7 + $0x18] sm:$0xff]  ;;  %v374_v31 = vld [vmem:[#allocation7 + $0x10] sm:$0xff]  ;;  %v373_v32 = vld [vmem:[#allocation7 + $0x8] sm:$0xff] }
  0x60   : > { %631 = vmatpush3.msra.mxu0 %v281_v5  ;;  %662 = vmatpush3.msra.mxu1 %v385_v20  ;;  %v372_v33 = vld [vmem:[#allocation7] sm:$0xff]  ;;  %v582_v34 = vld [vmem:[%s1171_s2] ss:$0 sm:$0xff]  ;;  %p855_p9 = pnand %p854_p7, %p848_p2 }
  0x61   : > { %632 = vmatprep.subr.mxu0 %v920_v0  ;;  %663 = vmatprep.subr.mxu1 %v920_v0  ;;  %v583_v47 = vld [vmem:[%s1173_s4] ss:$0 sm:$0xff] }
  0x62   : > { %633 = vmatpush3.msra.mxu0 %v280_v6  ;;  %664 = vmatpush3.msra.mxu1 %v384_v21 }
  0x63   : > { %634 = vmatprep.subr.mxu0 %v920_v0  ;;  %665 = vmatprep.subr.mxu1 %v920_v0 }
  0x64   : > { %635 = vmatpush3.msra.mxu0 %v279_v7  ;;  %666 = vmatpush3.msra.mxu1 %v383_v22 }
  0x65   : > { %636 = vmatprep.subr.mxu0 %v920_v0  ;;  %667 = vmatprep.subr.mxu1 %v920_v0 }
  0x66   : > { %637 = vmatpush3.msra.mxu0 %v278_v8  ;;  %668 = vmatpush3.msra.mxu1 %v382_v23 }
  0x67   : > { %638 = vmatprep.subr.mxu0 %v920_v0  ;;  %669 = vmatprep.subr.mxu1 %v920_v0 }
  0x68   : > { %639 = vmatpush3.msra.mxu0 %v277_v9  ;;  %670 = vmatpush3.msra.mxu1 %v381_v24 }
  0x69   : > { %640 = vmatprep.subr.mxu0 %v920_v0  ;;  %671 = vmatprep.subr.mxu1 %v920_v0 }
  0x6a   : > { %641 = vmatpush3.msra.mxu0 %v276_v10  ;;  %672 = vmatpush3.msra.mxu1 %v380_v25 }
  0x6b   : > { %642 = vmatprep.subr.mxu0 %v920_v0  ;;  %673 = vmatprep.subr.mxu1 %v920_v0 }
  0x6c   : > { %643 = vmatpush3.msra.mxu0 %v275_v11  ;;  %674 = vmatpush3.msra.mxu1 %v379_v26 }
  0x6d   : > { %644 = vmatprep.subr.mxu0 %v920_v0  ;;  %675 = vmatprep.subr.mxu1 %v920_v0 }
  0x6e   : > { %645 = vmatpush3.msra.mxu0 %v274_v12  ;;  %676 = vmatpush3.msra.mxu1 %v378_v27 }
  0x6f   : > { %646 = vmatprep.subr.mxu0 %v920_v0  ;;  %677 = vmatprep.subr.mxu1 %v920_v0 }
  0x70   : > { %647 = vmatpush3.msra.mxu0 %v273_v13  ;;  %678 = vmatpush3.msra.mxu1 %v377_v28 }
  0x71   : > { %648 = vmatprep.subr.mxu0 %v920_v0  ;;  %679 = vmatprep.subr.mxu1 %v920_v0 }
  0x72   : > { %649 = vmatpush3.msra.mxu0 %v272_v14  ;;  %680 = vmatpush3.msra.mxu1 %v376_v29 }
  0x73   : > { %650 = vmatprep.subr.mxu0 %v920_v0  ;;  %681 = vmatprep.subr.mxu1 %v920_v0 }
  0x74   : > { %651 = vmatpush3.msra.mxu0 %v271_v15  ;;  %682 = vmatpush3.msra.mxu1 %v375_v30 }
  0x75   : > { %652 = vmatprep.subr.mxu0 %v920_v0  ;;  %683 = vmatprep.subr.mxu1 %v920_v0 }
  0x76   : > { %653 = vmatpush3.msra.mxu0 %v270_v16  ;;  %684 = vmatpush3.msra.mxu1 %v374_v31 }
  0x77   : > { %655 = vmatmul.mubr.f32.vlgmr.msra.gmra.mxu0 %v1106_v17  ;;  %685 = vmatprep.subr.mxu1 %v920_v0 }
  0x78   : > { %686 = vmatpush3.msra.mxu1 %v373_v32 }
  0x79   : > { %687 = vmatprep.subr.mxu1 %v920_v0 }
  0x7a   : > { %688 = vmatpush3.msra.mxu1 %v372_v33 }
 0x137   : > { %v359_v35 = vpop.f32.mrf.mxu0 }
 0x138   : > { %v360_v36 = vadd.f32 %v582_v34, %v359_v35 }
 0x139   : > { %v656_v37 = vpop.f32.mrf.mxu0 }
 0x13a   : > { %v363_v38 = vmul.f32 %v360_v36, %v360_v36 }
 0x13c   : > { %v364_v39 = vmul.f32 %v363_v38, %v360_v36 }
 0x13e   : > { %v365_v40 = vmul.f32 0.044715, %v364_v39 }
 0x140   : > { %v366_v41 = vadd.f32 %v365_v40, %v360_v36 }
 0x142   : > { %v367_v42 = vmul.f32 0.7978846, %v366_v41 }
 0x144   : > { %763 = vtanh.f32 %v367_v42 }
 0x151   : > { %v764_v43 = vpop.eup %763 }
 0x152   : > { %v369_v44 = vadd.f32 1.0, %v764_v43 }
 0x154   : > { %v370_v45 = vmul.f32 0.5, %v369_v44 }
 0x156   : > { %v371_v46 = vmul.f32 %v370_v45, %v360_v36 }
 0x158   : > { %690 = vmatmul.mubr.f32.vlgmr.msra.gmra.mxu1 %v371_v46 }
 0x218   : > { %v461_v48 = vpop.f32.mrf.mxu1 }
 0x219   : > { %v462_v49 = vadd.f32 %v583_v47, %v461_v48 }
 0x21a   : > { %v691_v50 = vpop.f32.mrf.mxu1 }
 0x21b   : > { %v465_v51 = vadd.f32 %v462_v49, %v1106_v17 }
 0x21d   : > { %466 = vst [vmem:[%s268_s12] sm:$0xff] %v465_v51 }
 0x21e   : > { %858 = shalt.err (!%p855_p9)
}
 0x21f   : > { %s859_s17 = scalar_lea.hbm %s479_s28, 128  ;;  %s863_s26 = scalar_lea.hbm %s1174_s5, 256 }
 0x220   : > { %p860_p13 = scmp.ne.s32.totalorder %s479_s28, %s859_s17  ;;  %p864_p4 = scmp.lt.s32.totalorder %s479_s28, %s1174_s5 }
 0x221   : > { %p865_p8 = scmp.lt.s32.totalorder %s863_s26, %s859_s17 }
 0x222   : > { %p861_p5 = pnand %p860_p13, %p1190_p0 }
 0x223   : > { %p866_p3 = por %p865_p8, %p864_p4 }
 0x224   : > { %p862_p10 = pneg %p861_p5 }
 0x226   : > { %p867_p11 = pnand %p866_p3, %p862_p10 }
 0x228   : > { %870 = shalt.err (!%p867_p11)
}
 0x229   : > { %702 = dma.vmem_to_hbm [thread:$0]  (%p1190_p0), %s482_s30, 128, %s479_s28, %s468_s7  }
 0x22a PF: > { %s493_s11 = sand.u32 1, %s901_s18   ;;  %p1191_p1 = scmp.ne.s32.totalorder %s1180_s25, 0 }
 0x22b   : > { %p1192_p2 = scmp.ge.s32.totalorder %s913_s21, 2  ;;  %s494_s12 = scalar_lea.sflag [#allocation4], %s493_s11 }
 0x22d   : > { %p716_p6 = pnand %p1192_p2, %p1191_p1 }
 0x22f   : > { %p717_p12 = pneg %p716_p6 }
 0x231   : > { %896 = dma.done.wait (%p717_p12), %s494_s12, 128  }
 0x232   : > { %898 = vsyncadd (%p717_p12), %s494_s12, 4294967168  ;;  %p19_p7 = scmp.ge.s32.totalorder %s1025_s15, 4   ;;  %s1193_s18 = smov %s905_s19 }
 0x233   : > { %s1194_s19 = smov %s909_s20  ;;  %s1195_s20 = smov %s1041_s27 }
 0x234   : > { %s1196_s21 = smov %s1025_s15  ;;  %21 = sbr.rel (!%p19_p7) target bundleno = 6 (0x6), region = 93 }
 0x239   :  { %499 = vsyncpa [#allocation3], 1 }
 0x23a   :  { %501 = vsyncpa [#allocation3 + $0x1], 1 }
 0x23b   :  { %502 = vsyncpa [#allocation6], 1 }
 0x23c   :  { %503 = vsyncpa [#allocation4], 1 }
 0x23d   :  { %505 = vsyncpa [#allocation4 + $0x1], 1 }

// kernel: tpu_custom_call.1
= control target key start
LH: loop header
LB: loop body
LE: loop exit
PB: predicated region body
PF: predicated region fallthrough
CT: control target
= control target key end

     0   :  { %10 = vsyncpa [#allocation3], 0  ;;  %s1169_s0 = inlined_call_operand.hbm [shape: f32[16,128], index: 0, kind: input, shape index: {}]   ;;  %s1170_s1 = inlined_call_operand.hbm [shape: f32[128,128], index: 1, kind: input, shape index: {}]   ;;  %s1171_s2 = inlined_call_operand.vmem [shape: f32[1,128], index: 2, kind: input, shape index: {}]   ;;  %s1172_s3 = inlined_call_operand.hbm [shape: f32[128,128], index: 3, kind: input, shape index: {}]   ;;  %s1173_s4 = inlined_call_operand.vmem [shape: f32[1,128], index: 4, kind: input, shape index: {}]   ;;  %s1174_s5 = inlined_call_operand.hbm [shape: f32[16,128], index: 5, kind: output, shape index: {}]  }
   0x1   :  { %12 = vsyncpa [#allocation3 + $0x1], 0 }
   0x2   :  { %13 = vsyncpa [#allocation6], 0 }
   0x3   :  { %14 = vsyncpa [#allocation4], 0 }
   0x4   :  { %16 = vsyncpa [#allocation4 + $0x1], 0  ;;  %s953_s18 = smov 0   ;;  %s955_s19 = smov 0  }
   0x5   :  { %s957_s20 = smov 0   ;;  %s959_s21 = smov 0  }
   0x6 LB: > { %s974_s22 = sadd.s32 4294967295, %s913_s21   ;;  %s570_s23 = sadd.s32 4294967294, %s913_s21   ;;  %s913_s21 = sphi %s959_s21, %s1196_s21   ;;  %s909_s20 = sphi %s957_s20, %s1195_s20   ;;  %s905_s19 = sphi %s955_s19, %s1194_s19   ;;  %s901_s18 = sphi %s953_s18, %s1193_s18  }
   0x7   : > { %p42_p0 = scmp.ne.s32.totalorder %s905_s19, %s901_s18  ;;  %p1175_p1 = scmp.eq.s32.totalorder %s974_s22, 0 }
   0x8   : > { %p156_p3 = scmp.eq.s32.totalorder %s570_s23, 1  ;;  %p571_p5 = scmp.ge.s32.totalorder %s913_s21, 1 }
   0x9   : > { %p983_p4 = por %p1175_p1, %p42_p0  ;;  %p163_p7 = scmp.lt.s32.totalorder %s913_s21, 3 }
   0xa   : > { %p988_p6 = por %p156_p3, %p42_p0  ;;  %s915_s27 = smov [#allocation5]  }
   0xb   : > { %s1179_s24 = scalar_select %p983_p4, 1, 0 }
   0xc   : > { %s1180_s25 = scalar_select %p988_p6, 1, 0 }
   0xd   : > { %p993_p8 = pnand %p571_p5, %p163_p7  ;;  %s175_s28 = sshll.u32 %s915_s27, 4  ;;  %s176_s28 = int_to_ptr.vmem [resolvable:$true] %s175_s28 }
   0xe   : > { %s916_s30 = smov [#allocation7]   ;;  %s776_s7 = scalar_lea.vmem %s176_s28, 2048 }
   0xf   : > { %s1181_s26 = scalar_select %p993_p8, 1, 0 }
  0x10   : > { %p704_p9 = pneg %p993_p8  ;;  %s191_s6 = sshll.u32 %s916_s30, 4  ;;  %s192_s6 = int_to_ptr.vmem [resolvable:$true] %s191_s6 }
  0x11   : > { %p777_p13 = scmp.ne.s32.totalorder %s176_s28, %s776_s7  ;;  %p784_p5 = scmp.lt.s32.totalorder %s176_s28, %s176_s28 }
  0x12   : > { %p1002_p11 = pnand %p704_p9, %p1175_p1  ;;  %p785_p7 = scmp.lt.s32.totalorder %s776_s7, %s776_s7 }
  0x14   : > { %p767_p12 = pneg %p1002_p11  ;;  %p786_p10 = por %p785_p7, %p784_p5 }
  0x16   : > { %p779_p0 = pnand %p777_p13, %p767_p12 }
  0x18   : > { %p780_p3 = pneg %p779_p0 }
  0x1a   : > { %p787_p9 = pnand %p786_p10, %p780_p3 }
  0x1c   : > { %790 = shalt.err (!%p787_p9)
}
  0x1d   : > { %s917_s8 = smov 128   ;;  %s918_s9 = smov 8  }
  0x1e   : > { %707 = dma.hbm_to_vmem [thread:$0]  (!%p1002_p11), %s1170_s1, 2048, %s176_s28, [#allocation6], %s917_s8, %s917_s8, %s918_s9  }
  0x1f   : > { %s802_s12 = scalar_lea.vmem %s192_s6, 2048  ;;  %p810_p2 = scmp.lt.s32.totalorder %s192_s6, %s192_s6 }
  0x20   : > { %p803_p1 = scmp.ne.s32.totalorder %s192_s6, %s802_s12  ;;  %p811_p6 = scmp.lt.s32.totalorder %s802_s12, %s802_s12 }
  0x22   : > { %p805_p13 = pnand %p803_p1, %p767_p12  ;;  %p812_p5 = por %p811_p6, %p810_p2 }
  0x24   : > { %p806_p0 = pneg %p805_p13 }
  0x26   : > { %p813_p10 = pnand %p812_p5, %p806_p0 }
  0x28   : > { %816 = shalt.err (!%p813_p10)
}
  0x29   : > { %710 = dma.hbm_to_vmem [thread:$0]  (!%p1002_p11), %s1172_s3, 2048, %s192_s6, [#allocation6], %s917_s8, %s917_s8, %s918_s9  }
  0x2a   : > { %s1025_s15 = sadd.s32 1, %s913_s21   ;;  %s29_s16 = sadd.s32 1, %s909_s20 }
  0x2b   : > { %s26_s17 = ssub.s32 %s913_s21, %s1025_s15  ;;  %p36_p1 = scmp.ne.s32.totalorder %s909_s20, %s905_s19 }
  0x2c   : > { %p27_p2 = scmp.eq.s32.totalorder %s26_s17, 0  ;;  %p37_p6 = scmp.eq.s32.totalorder %s913_s21, 0 }
  0x2d   : > { %p1183_p12 = scmp.eq.s32.totalorder %s974_s22, 1  ;;  %p721_p7 = scmp.lt.s32.totalorder %s913_s21, 2 }
  0x2e   : > { %s1041_s27 = scalar_select %p27_p2, %s909_s20, %s29_s16  }
  0x2f   : > { %p1035_p3 = por %p1183_p12, %p36_p1  ;;  %p38_p9 = por %p37_p6, %p36_p1 }
  0x30   : > { %s208_s28 = sand.u32 1, %s909_s20   ;;  %s576_s30 = sshll.u32 %s913_s21, 7 }
  0x31   : > { %s1184_s23 = scalar_select %p1035_p3, 1, 0 }
  0x32   : > { %s575_s29 = sshll.u32 %s208_s28, 3  ;;  %s1048_s8 = scalar_lea.hbm %s1169_s0, %s576_s30 }
  0x33   : > { %s212_s9 = scalar_lea.vmem [#allocation2], %s575_s29  ;;  %p1050_p11 = pnand %p721_p7, %p38_p9 }
  0x34   : > { %s219_s10 = sshll.u32 %s212_s9, 4  ;;  %s209_s12 = scalar_lea.sflag [#allocation3], %s208_s28  ;;  %s220_s10 = int_to_ptr.vmem [resolvable:$true] %s219_s10 }
  0x35   : > { %s817_s13 = scalar_lea.hbm %s1048_s8, 128  ;;  %p819_p0 = pneg %p1050_p11 }
  0x36   : > { %p818_p13 = scmp.ne.s32.totalorder %s1048_s8, %s817_s13  ;;  %s822_s17 = scalar_lea.hbm %s1169_s0, 256 }
  0x37   : > { %p823_p1 = scmp.lt.s32.totalorder %s1048_s8, %s1169_s0  ;;  %p824_p2 = scmp.lt.s32.totalorder %s822_s17, %s817_s13 }
  0x38   : > { %p820_p5 = pnand %p819_p0, %p818_p13 }
  0x39   : > { %p825_p6 = por %p824_p2, %p823_p1 }
  0x3a   : > { %p821_p10 = pneg %p820_p5 }
  0x3c   : > { %p826_p12 = pnand %p825_p6, %p821_p10 }
  0x3e   : > { %829 = shalt.err (!%p826_p12)
}
  0x3f   : > { %s830_s6 = scalar_lea.vmem %s220_s10, 128  ;;  %s919_s28 = smov [#allocation2]  }
  0x40   : > { %p831_p7 = scmp.ne.s32.totalorder %s220_s10, %s830_s6  ;;  %s835_s7 = sshll.u32 %s919_s28, 4  ;;  %s836_s7 = int_to_ptr.vmem [resolvable:$false] %s835_s7 }
  0x41   : > { %s837_s9 = scalar_lea.vmem %s836_s7, 256  ;;  %p838_p13 = scmp.lt.s32.totalorder %s220_s10, %s836_s7 }
  0x42   : > { %p833_p9 = pnand %p831_p7, %p819_p0  ;;  %p839_p5 = scmp.lt.s32.totalorder %s837_s9, %s830_s6 }
  0x44   : > { %p834_p3 = pneg %p833_p9  ;;  %p840_p4 = por %p839_p5, %p838_p13 }
  0x46   : > { %p841_p8 = pnand %p840_p4, %p834_p3 }
  0x48   : > { %844 = shalt.err (!%p841_p8)
}
  0x49   : > { %714 = dma.hbm_to_vmem [thread:$0]  (!%p1050_p11), %s1048_s8, 128, %s220_s10, %s209_s12  }
  0x4a   : > { %p1186_p10 = scmp.ne.s32.totalorder %s1181_s26, 0 }
  0x4b   : > { %s1071_s13 = sand.u32 (!%p1186_p10), 1, %s905_s19   ;;  %p1187_p4 = scmp.ne.s32.totalorder (!%p1186_p10), %s1179_s24, 0 }
  0x4c   : > { %228 = sbr.rel (%p1186_p10) target bundleno = 554 (0x22a), region = 40  ;;  %s578_s14 = sshll.u32 (!%p1186_p10), %s1071_s13, 3 }
  0x4d   : > { %s231_s16 = scalar_lea.sflag (!%p1186_p10), [#allocation3], %s1071_s13  ;;  %s1077_s17 = scalar_lea.vmem (!%p1186_p10), [#allocation2], %s578_s14 }
  0x51   : > { %888 = dma.done.wait (%p1187_p4), %s231_s16, 128  }
  0x52   : > { %890 = vsyncadd (%p1187_p4), %s231_s16, 4294967168  ;;  %p1188_p8 = scmp.eq.s32.totalorder %s974_s22, 0 }
  0x54   : > { %892 = dma.done.wait (%p1188_p8), [#allocation6], 4096   ;;  %p1189_p3 = pmov %p1188_p8 }
  0x55   : > { %v920_v0 = vmov 0.0   ;;  %vm921_vm0 = vmmov 0   ;;  %v285_v1 = vld [vmem:[#allocation5 + $0x78] sm:$0xff]  ;;  %v284_v2 = vld [vmem:[#allocation5 + $0x70] sm:$0xff]  ;;  %v283_v3 = vld [vmem:[#allocation5 + $0x68] sm:$0xff]  ;;  %s585_s11 = sshll.u32 %s974_s22, 7 }
  0x56   : > { %894 = vsyncadd (%p1189_p3), [#allocation6], 4294963200  ;;  %622 = vmatprep.subr.mxu0 %v920_v0  ;;  %654 = vmatprep.mubr.msk.f32.mxu0 %vm921_vm0, %v920_v0  ;;  %v282_v4 = vld [vmem:[#allocation5 + $0x60] sm:$0xff]  ;;  %v281_v5 = vld [vmem:[#allocation5 + $0x58] sm:$0xff]  ;;  %s268_s12 = scalar_lea.vmem [#allocation8], %s578_s14  ;;  %s479_s28 = scalar_lea.hbm %s1174_s5, %s585_s11 }
  0x57   : > { %657 = vmatprep.subr.mxu1 %v920_v0  ;;  %689 = vmatprep.mubr.msk.f32.mxu1 %vm921_vm0, %v920_v0  ;;  %v280_v6 = vld [vmem:[#allocation5 + $0x50] sm:$0xff]  ;;  %v279_v7 = vld [vmem:[#allocation5 + $0x48] sm:$0xff]  ;;  %v278_v8 = vld [vmem:[#allocation5 + $0x40] sm:$0xff]  ;;  %s481_s30 = sshll.u32 %s268_s12, 4  ;;  %s468_s7 = scalar_lea.sflag [#allocation4], %s1071_s13  ;;  %s482_s30 = int_to_ptr.vmem [resolvable:$true] %s481_s30 }
  0x58   : > { %623 = vmatpush3.msra.mxu0 %v285_v1  ;;  %v277_v9 = vld [vmem:[#allocation5 + $0x38] sm:$0xff]  ;;  %v276_v10 = vld [vmem:[#allocation5 + $0x30] sm:$0xff]  ;;  %v275_v11 = vld [vmem:[#allocation5 + $0x28] sm:$0xff]  ;;  %s845_s9 = scalar_lea.vmem %s482_s30, 128  ;;  %p1190_p0 = scmp.ne.s32.totalorder %s1184_s23, 0 }
  0x59   : > { %624 = vmatprep.subr.mxu0 %v920_v0  ;;  %v274_v12 = vld [vmem:[#allocation5 + $0x20] sm:$0xff]  ;;  %v273_v13 = vld [vmem:[#allocation5 + $0x18] sm:$0xff]  ;;  %v272_v14 = vld [vmem:[#allocation5 + $0x10] sm:$0xff]  ;;  %p846_p11 = scmp.ne.s32.totalorder %s482_s30, %s845_s9  ;;  %s922_s22 = smov [#allocation8]  }
  0x5a   : > { %625 = vmatpush3.msra.mxu0 %v284_v2  ;;  %v271_v15 = vld [vmem:[#allocation5 + $0x8] sm:$0xff]  ;;  %v270_v16 = vld [vmem:[#allocation5] sm:$0xff]  ;;  %v1106_v17 = vld [vmem:[%s1077_s17] sm:$0xff]  ;;  %s849_s16 = sshll.u32 %s922_s22, 4  ;;  %s850_s16 = int_to_ptr.vmem [resolvable:$false] %s849_s16 }
  0x5b   : > { %626 = vmatprep.subr.mxu0 %v920_v0  ;;  %v387_v18 = vld [vmem:[#allocation7 + $0x78] sm:$0xff]  ;;  %v386_v19 = vld [vmem:[#allocation7 + $0x70] sm:$0xff]  ;;  %v385_v20 = vld [vmem:[#allocation7 + $0x68] sm:$0xff]  ;;  %p847_p1 = pnand %p846_p11, %p1190_p0  ;;  %s851_s14 = scalar_lea.vmem %s850_s16, 256 }
  0x5c   : > { %627 = vmatpush3.msra.mxu0 %v283_v3  ;;  %658 = vmatpush3.msra.mxu1 %v387_v18  ;;  %v384_v21 = vld [vmem:[#allocation7 + $0x60] sm:$0xff]  ;;  %v383_v22 = vld [vmem:[#allocation7 + $0x58] sm:$0xff]  ;;  %v382_v23 = vld [vmem:[#allocation7 + $0x50] sm:$0xff]  ;;  %p852_p6 = scmp.lt.s32.totalorder %s482_s30, %s850_s16  ;;  %p853_p12 = scmp.lt.s32.totalorder %s851_s14, %s845_s9 }
  0x5d   : > { %628 = vmatprep.subr.mxu0 %v920_v0  ;;  %659 = vmatprep.subr.mxu1 %v920_v0  ;;  %v381_v24 = vld [vmem:[#allocation7 + $0x48] sm:$0xff]  ;;  %v380_v25 = vld [vmem:[#allocation7 + $0x40] sm:$0xff]  ;;  %v379_v26 = vld [vmem:[#allocation7 + $0x38] sm:$0xff]  ;;  %p848_p2 = pneg %p847_p1 }
  0x5e   : > { %629 = vmatpush3.msra.mxu0 %v282_v4  ;;  %660 = vmatpush3.msra.mxu1 %v386_v19  ;;  %v378_v27 = vld [vmem:[#allocation7 + $0x30] sm:$0xff]  ;;  %v377_v28 = vld [vmem:[#allocation7 + $0x28] sm:$0xff]  ;;  %v376_v29 = vld [vmem:[#allocation7 + $0x20] sm:$0xff]  ;;  %p854_p7 = por %p853_p12, %p852_p6 }
  0x5f   : > { %630 = vmatprep.subr.mxu0 %v920_v0  ;;  %661 = vmatprep.subr.mxu1 %v920_v0  ;;  %v375_v30 = vld [vmem:[#allocation7 + $0x18] sm:$0xff]  ;;  %v374_v31 = vld [vmem:[#allocation7 + $0x10] sm:$0xff]  ;;  %v373_v32 = vld [vmem:[#allocation7 + $0x8] sm:$0xff] }
  0x60   : > { %631 = vmatpush3.msra.mxu0 %v281_v5  ;;  %662 = vmatpush3.msra.mxu1 %v385_v20  ;;  %v372_v33 = vld [vmem:[#allocation7] sm:$0xff]  ;;  %v582_v34 = vld [vmem:[%s1171_s2] ss:$0 sm:$0xff]  ;;  %p855_p9 = pnand %p854_p7, %p848_p2 }
  0x61   : > { %632 = vmatprep.subr.mxu0 %v920_v0  ;;  %663 = vmatprep.subr.mxu1 %v920_v0  ;;  %v583_v47 = vld [vmem:[%s1173_s4] ss:$0 sm:$0xff] }
  0x62   : > { %633 = vmatpush3.msra.mxu0 %v280_v6  ;;  %664 = vmatpush3.msra.mxu1 %v384_v21 }
  0x63   : > { %634 = vmatprep.subr.mxu0 %v920_v0  ;;  %665 = vmatprep.subr.mxu1 %v920_v0 }
  0x64   : > { %635 = vmatpush3.msra.mxu0 %v279_v7  ;;  %666 = vmatpush3.msra.mxu1 %v383_v22 }
  0x65   : > { %636 = vmatprep.subr.mxu0 %v920_v0  ;;  %667 = vmatprep.subr.mxu1 %v920_v0 }
  0x66   : > { %637 = vmatpush3.msra.mxu0 %v278_v8  ;;  %668 = vmatpush3.msra.mxu1 %v382_v23 }
  0x67   : > { %638 = vmatprep.subr.mxu0 %v920_v0  ;;  %669 = vmatprep.subr.mxu1 %v920_v0 }
  0x68   : > { %639 = vmatpush3.msra.mxu0 %v277_v9  ;;  %670 = vmatpush3.msra.mxu1 %v381_v24 }
  0x69   : > { %640 = vmatprep.subr.mxu0 %v920_v0  ;;  %671 = vmatprep.subr.mxu1 %v920_v0 }
  0x6a   : > { %641 = vmatpush3.msra.mxu0 %v276_v10  ;;  %672 = vmatpush3.msra.mxu1 %v380_v25 }
  0x6b   : > { %642 = vmatprep.subr.mxu0 %v920_v0  ;;  %673 = vmatprep.subr.mxu1 %v920_v0 }
  0x6c   : > { %643 = vmatpush3.msra.mxu0 %v275_v11  ;;  %674 = vmatpush3.msra.mxu1 %v379_v26 }
  0x6d   : > { %644 = vmatprep.subr.mxu0 %v920_v0  ;;  %675 = vmatprep.subr.mxu1 %v920_v0 }
  0x6e   : > { %645 = vmatpush3.msra.mxu0 %v274_v12  ;;  %676 = vmatpush3.msra.mxu1 %v378_v27 }
  0x6f   : > { %646 = vmatprep.subr.mxu0 %v920_v0  ;;  %677 = vmatprep.subr.mxu1 %v920_v0 }
  0x70   : > { %647 = vmatpush3.msra.mxu0 %v273_v13  ;;  %678 = vmatpush3.msra.mxu1 %v377_v28 }
  0x71   : > { %648 = vmatprep.subr.mxu0 %v920_v0  ;;  %679 = vmatprep.subr.mxu1 %v920_v0 }
  0x72   : > { %649 = vmatpush3.msra.mxu0 %v272_v14  ;;  %680 = vmatpush3.msra.mxu1 %v376_v29 }
  0x73   : > { %650 = vmatprep.subr.mxu0 %v920_v0  ;;  %681 = vmatprep.subr.mxu1 %v920_v0 }
  0x74   : > { %651 = vmatpush3.msra.mxu0 %v271_v15  ;;  %682 = vmatpush3.msra.mxu1 %v375_v30 }
  0x75   : > { %652 = vmatprep.subr.mxu0 %v920_v0  ;;  %683 = vmatprep.subr.mxu1 %v920_v0 }
  0x76   : > { %653 = vmatpush3.msra.mxu0 %v270_v16  ;;  %684 = vmatpush3.msra.mxu1 %v374_v31 }
  0x77   : > { %655 = vmatmul.mubr.f32.vlgmr.msra.gmra.mxu0 %v1106_v17  ;;  %685 = vmatprep.subr.mxu1 %v920_v0 }
  0x78   : > { %686 = vmatpush3.msra.mxu1 %v373_v32 }
  0x79   : > { %687 = vmatprep.subr.mxu1 %v920_v0 }
  0x7a   : > { %688 = vmatpush3.msra.mxu1 %v372_v33 }
 0x137   : > { %v359_v35 = vpop.f32.mrf.mxu0 }
 0x138   : > { %v360_v36 = vadd.f32 %v582_v34, %v359_v35 }
 0x139   : > { %v656_v37 = vpop.f32.mrf.mxu0 }
 0x13a   : > { %v363_v38 = vmul.f32 %v360_v36, %v360_v36 }
 0x13c   : > { %v364_v39 = vmul.f32 %v363_v38, %v360_v36 }
 0x13e   : > { %v365_v40 = vmul.f32 0.044715, %v364_v39 }
 0x140   : > { %v366_v41 = vadd.f32 %v365_v40, %v360_v36 }
 0x142   : > { %v367_v42 = vmul.f32 0.7978846, %v366_v41 }
 0x144   : > { %763 = vtanh.f32 %v367_v42 }
 0x151   : > { %v764_v43 = vpop.eup %763 }
 0x152   : > { %v369_v44 = vadd.f32 1.0, %v764_v43 }
 0x154   : > { %v370_v45 = vmul.f32 0.5, %v369_v44 }
 0x156   : > { %v371_v46 = vmul.f32 %v370_v45, %v360_v36 }
 0x158   : > { %690 = vmatmul.mubr.f32.vlgmr.msra.gmra.mxu1 %v371_v46 }
 0x218   : > { %v461_v48 = vpop.f32.mrf.mxu1 }
 0x219   : > { %v462_v49 = vadd.f32 %v583_v47, %v461_v48 }
 0x21a   : > { %v691_v50 = vpop.f32.mrf.mxu1 }
 0x21b   : > { %v465_v51 = vadd.f32 %v462_v49, %v1106_v17 }
 0x21d   : > { %466 = vst [vmem:[%s268_s12] sm:$0xff] %v465_v51 }
 0x21e   : > { %858 = shalt.err (!%p855_p9)
}
 0x21f   : > { %s859_s17 = scalar_lea.hbm %s479_s28, 128  ;;  %s863_s26 = scalar_lea.hbm %s1174_s5, 256 }
 0x220   : > { %p860_p13 = scmp.ne.s32.totalorder %s479_s28, %s859_s17  ;;  %p864_p4 = scmp.lt.s32.totalorder %s479_s28, %s1174_s5 }
 0x221   : > { %p865_p8 = scmp.lt.s32.totalorder %s863_s26, %s859_s17 }
 0x222   : > { %p861_p5 = pnand %p860_p13, %p1190_p0 }
 0x223   : > { %p866_p3 = por %p865_p8, %p864_p4 }
 0x224   : > { %p862_p10 = pneg %p861_p5 }
 0x226   : > { %p867_p11 = pnand %p866_p3, %p862_p10 }
 0x228   : > { %870 = shalt.err (!%p867_p11)
}
 0x229   : > { %702 = dma.vmem_to_hbm [thread:$0]  (%p1190_p0), %s482_s30, 128, %s479_s28, %s468_s7  }
 0x22a PF: > { %s493_s11 = sand.u32 1, %s901_s18   ;;  %p1191_p1 = scmp.ne.s32.totalorder %s1180_s25, 0 }
 0x22b   : > { %p1192_p2 = scmp.ge.s32.totalorder %s913_s21, 2  ;;  %s494_s12 = scalar_lea.sflag [#allocation4], %s493_s11 }
 0x22d   : > { %p716_p6 = pnand %p1192_p2, %p1191_p1 }
 0x22f   : > { %p717_p12 = pneg %p716_p6 }
 0x231   : > { %896 = dma.done.wait (%p717_p12), %s494_s12, 128  }
 0x232   : > { %898 = vsyncadd (%p717_p12), %s494_s12, 4294967168  ;;  %p19_p7 = scmp.ge.s32.totalorder %s1025_s15, 4   ;;  %s1193_s18 = smov %s905_s19 }
 0x233   : > { %s1194_s19 = smov %s909_s20  ;;  %s1195_s20 = smov %s1041_s27 }
 0x234   : > { %s1196_s21 = smov %s1025_s15  ;;  %21 = sbr.rel (!%p19_p7) target bundleno = 6 (0x6), region = 93 }
 0x239   :  { %499 = vsyncpa [#allocation3], 1 }
 0x23a   :  { %501 = vsyncpa [#allocation3 + $0x1], 1 }
 0x23b   :  { %502 = vsyncpa [#allocation6], 1 }
 0x23c   :  { %503 = vsyncpa [#allocation4], 1 }
 0x23d   :  { %505 = vsyncpa [#allocation4 + $0x1], 1 }

</bundles_post_ra>
